<compile_context>
chip_gen: v7x
topology: tpu7x:2x2x1
jax: 0.10.0
libtpu: 0.0.40
codegen_flags: <defaults>
</compile_context>

<pallas_src>
import functools
import math

import jax
import jax.numpy as jnp
from jax import lax
from jax.experimental import pallas as pl
from jax.experimental.pallas import tpu as pltpu

LANE = 128


def _round_up(x, m):
    return ((x + m - 1) // m) * m


def mhsa_kernel(x_ref, wqkv_ref, bqkv_ref, wo_ref, bo_ref, o_ref,
                qkv_ref, cat_ref, *, n_heads, hd_pad, exp_dtype):
    h = pl.program_id(1)
    qcols = n_heads * hd_pad        # width of the Q (and K, V) column group

    # ---- Full-width QKV projection, once per batch row (h == 0) -----------
    # Single (S, D) x (D, 3*H*hd_pad) MXU matmul, weights resident in VMEM.
    # Q is pre-scaled by 1/sqrt(hd) (folded into wq/bq in the wrapper).
    @pl.when(h == 0)
    def _():
        qkv = jnp.dot(x_ref[0], wqkv_ref[...],
                      preferred_element_type=jnp.float32) + bqkv_ref[...]
        qkv_ref[...] = qkv.astype(jnp.bfloat16)

    # ---- Per-head attention ------------------------------------------------
    # hd_pad is a multiple of 128, so all slice offsets are 128-lane aligned.
    q_off = pl.multiple_of(h * hd_pad, LANE)
    k_off = pl.multiple_of(qcols + h * hd_pad, LANE)
    v_off = pl.multiple_of(2 * qcols + h * hd_pad, LANE)

    q = qkv_ref[:, pl.ds(q_off, hd_pad)]          # (S, hd_pad) bf16
    k = qkv_ref[:, pl.ds(k_off, hd_pad)]
    v = qkv_ref[:, pl.ds(v_off, hd_pad)]

    # Scores: contract the last dims directly (no transposed copy of k).
    s = lax.dot_general(q, k, (((1,), (1,)), ((), ())),
                        preferred_element_type=jnp.float32)      # (S, S) f32

    # Softmax: stats in f32; exponent in bf16 on v6e/v7x, f32 on v5e.
    m = jnp.max(s, axis=-1, keepdims=True)
    p = jnp.exp((s - m).astype(exp_dtype))
    l = jnp.sum(p, axis=-1, keepdims=True, dtype=jnp.float32)

    # Unnormalized PV; normalize the small (S, hd_pad) result with an EUP
    # reciprocal instead of dividing the (S, S) matrix.
    o_h = jnp.dot(p.astype(jnp.bfloat16), v,
                  preferred_element_type=jnp.float32)            # (S, hd_pad)
    o_h = o_h * pl.reciprocal(l, approx=True)

    # Concat-by-store into the (S, H*hd_pad) scratch (128-lane aligned offset).
    cat_ref[:, pl.ds(q_off, hd_pad)] = o_h.astype(jnp.bfloat16)

    # ---- Output projection, once per batch row (last head) ----------------
    # Single full-K (S, H*hd_pad) x (H*hd_pad, D) matmul with resident W_o.
    @pl.when(h == n_heads - 1)
    def _():
        out = jnp.dot(cat_ref[...], wo_ref[...],
                      preferred_element_type=jnp.float32) + bo_ref[...]
        o_ref[0] = out.astype(o_ref.dtype)


def pack_params(params, n_heads, hd_pad):
    """Pack (d_in, d_out)-layout weights into the kernel's padded layout.

    - folds the 1/sqrt(head_dim) softmax scale into wq/bq,
    - zero-pads every head's Q/K/V column block (and the matching W_o row
      block) up to hd_pad (multiple of 128) so in-kernel slices are lane-aligned,
    - packs Q|K|V into one (D, 3*H*hd_pad) bf16 matrix (kept resident in VMEM),
    - packs fc_out into (H*hd_pad, D) bf16; biases stay f32.
    """
    wq, bq, wk, bk, wv, bv, wo, bo = params
    D = wq.shape[0]
    hd = D // n_heads
    pad = hd_pad - hd
    scale = 1.0 / math.sqrt(hd)

    wq = wq * scale
    bq = bq * scale

    def pad_cols(w):        # (D, D) -> (D, H*hd_pad)
        w = w.reshape(D, n_heads, hd)
        w = jnp.pad(w, ((0, 0), (0, 0), (0, pad)))
        return w.reshape(D, n_heads * hd_pad)

    def pad_bias(b):        # (1, D) -> (1, H*hd_pad)
        b = b.reshape(1, n_heads, hd)
        b = jnp.pad(b, ((0, 0), (0, 0), (0, pad)))
        return b.reshape(1, n_heads * hd_pad)

    wqkv = jnp.concatenate([pad_cols(wq), pad_cols(wk), pad_cols(wv)], axis=-1)
    bqkv = jnp.concatenate([pad_bias(bq), pad_bias(bk), pad_bias(bv)], axis=-1)

    wo_p = wo.reshape(n_heads, hd, D)
    wo_p = jnp.pad(wo_p, ((0, 0), (0, pad), (0, 0)))
    wo_p = wo_p.reshape(n_heads * hd_pad, D)

    return (wqkv.astype(jnp.bfloat16), bqkv.astype(jnp.float32),
            wo_p.astype(jnp.bfloat16), bo.astype(jnp.float32))


def _chip_tuning():
    """Per-generation knobs: bf16 exp only where the EUP supports it; VMEM limit."""
    try:
        kind = jax.devices()[0].device_kind.lower()
    except Exception:
        kind = ""
    bf16_eup = ("v6" in kind) or ("v7" in kind)   # v5e and older: no bf16 EUP
    exp_dtype = jnp.bfloat16 if bf16_eup else jnp.float32
    # v7x has 64 MiB physical VMEM -> leave headroom; v5e/v6e have 128 MiB.
    vmem_limit = (48 if "v7" in kind else 64) * 1024 * 1024
    return exp_dtype, vmem_limit


def mhsa_forward(x, params, n_heads):
    B, S, D = x.shape
    hd = D // n_heads
    hd_pad = _round_up(hd, LANE)
    wqkv, bqkv, wo_p, bo = pack_params(params, n_heads, hd_pad)

    exp_dtype, vmem_limit = _chip_tuning()
    kernel = functools.partial(mhsa_kernel, n_heads=n_heads, hd_pad=hd_pad,
                               exp_dtype=exp_dtype)
    qkv_cols = 3 * n_heads * hd_pad

    return pl.pallas_call(
        kernel,
        out_shape=jax.ShapeDtypeStruct((B, S, D), x.dtype),
        grid=(B, n_heads),
        in_specs=[
            pl.BlockSpec((1, S, D), lambda b, h: (b, 0, 0)),              # x (bf16)
            pl.BlockSpec((D, qkv_cols), lambda b, h: (0, 0)),             # W_qkv (resident)
            pl.BlockSpec((1, qkv_cols), lambda b, h: (0, 0)),             # b_qkv (resident)
            pl.BlockSpec((n_heads * hd_pad, D), lambda b, h: (0, 0)),     # W_o (resident)
            pl.BlockSpec((1, D), lambda b, h: (0, 0)),                    # b_o (resident)
        ],
        out_specs=pl.BlockSpec((1, S, D), lambda b, h: (b, 0, 0)),
        scratch_shapes=[
            pltpu.VMEM((S, qkv_cols), jnp.bfloat16),           # fused QKV stash
            pltpu.VMEM((S, n_heads * hd_pad), jnp.bfloat16),   # head concat
        ],
        compiler_params=pltpu.CompilerParams(
            dimension_semantics=("parallel", "arbitrary"),
            vmem_limit_bytes=vmem_limit,
        ),
    )(x.astype(jnp.bfloat16), wqkv, bqkv, wo_p, bo)


def init_params(key, d_model):
    """Deterministic init mimicking nn.Linear's uniform(-1/sqrt(in), 1/sqrt(in))."""
    bound = 1.0 / math.sqrt(d_model)
    keys = jax.random.split(key, 8)

    def lin(kw, kb):
        w = jax.random.uniform(kw, (d_model, d_model), jnp.float32, -bound, bound)
        b = jax.random.uniform(kb, (1, d_model), jnp.float32, -bound, bound)
        return w, b

    wq, bq = lin(keys[0], keys[1])
    wk, bk = lin(keys[2], keys[3])
    wv, bv = lin(keys[4], keys[5])
    wo, bo = lin(keys[6], keys[7])
    return (wq, bq, wk, bk, wv, bv, wo, bo)


def mhsa_reference(x, params, n_heads):
    """Pure-JAX f32 reference reproducing the PyTorch forward."""
    wq, bq, wk, bk, wv, bv, wo, bo = params
    B, S, D = x.shape
    hd = D // n_heads

    def split(t):  # (B,S,D) -> (B,H,S,hd)
        return t.reshape(B, S, n_heads, hd).transpose(0, 2, 1, 3)

    Q = split(x @ wq + bq)
    K = split(x @ wk + bk)
    V = split(x @ wv + bv)
    scores = jnp.einsum("bhqd,bhkd->bhqk", Q, K) / math.sqrt(hd)
    attn = jax.nn.softmax(scores, axis=-1)
    out = jnp.einsum("bhqk,bhkd->bhqd", attn, V)
    out = out.transpose(0, 2, 1, 3).reshape(B, S, D)
    return out @ wo + bo


if __name__ == "__main__":
    batch, seq, d_model, n_heads = 2, 8, 32, 4

    key = jax.random.PRNGKey(0)
    kx, kp = jax.random.split(key)
    x = jax.random.normal(kx, (batch, seq, d_model), jnp.float32)
    params = init_params(kp, d_model)

    out = mhsa_forward(x, params, n_heads)
    out = jax.block_until_ready(out)

    ref = mhsa_reference(x, params, n_heads)
    assert out.shape == (batch, seq, d_model)
    # bf16 MXU operands + bf16 exp (v6e/v7x) + approx reciprocal: compare with
    # bf16-level tolerance (use approx=False / f32 exp if tighter accuracy needed).
    assert jnp.allclose(out, ref, atol=5e-2, rtol=5e-2), "mismatch vs reference"

    print("KERNEL_OK")
</pallas_src>

<mosaic_0001>
module attributes {stable_mosaic.version = 11 : i64} {
  func.func @mhsa_kernel(%arg0: i32, %arg1: i32, %arg2: memref<1x8x32xbf16, #tpu.memory_space<vmem>>, %arg3: memref<32x1536xbf16, #tpu.memory_space<vmem>>, %arg4: memref<1x1536xf32, #tpu.memory_space<vmem>>, %arg5: memref<512x32xbf16, #tpu.memory_space<vmem>>, %arg6: memref<1x32xf32, #tpu.memory_space<vmem>>, %arg7: memref<1x8x32xf32, #tpu.memory_space<vmem>>, %arg8: memref<8x1536xbf16, #tpu.memory_space<vmem>>, %arg9: memref<8x512xbf16, #tpu.memory_space<vmem>>) attributes {dimension_semantics = [#tpu.dimension_semantics<parallel>, #tpu.dimension_semantics<arbitrary>], iteration_bounds = array<i64: 2, 4>, scalar_prefetch = 0 : i64, scratch_operands = 2 : i64, tpu.core_type = #tpu.core_type<tc>, window_params = [{transform_indices = @transform_0, window_bounds = array<i64: 1, 8, 32>}, {pipeline_mode = #tpu.pipeline_mode<synchronous>, transform_indices = @transform_1, window_bounds = array<i64: 32, 1536>}, {pipeline_mode = #tpu.pipeline_mode<synchronous>, transform_indices = @transform_2, window_bounds = array<i64: 1, 1536>}, {pipeline_mode = #tpu.pipeline_mode<synchronous>, transform_indices = @transform_3, window_bounds = array<i64: 512, 32>}, {pipeline_mode = #tpu.pipeline_mode<synchronous>, transform_indices = @transform_4, window_bounds = array<i64: 1, 32>}, {transform_indices = @transform_5, window_bounds = array<i64: 1, 8, 32>}]} {
    %c0_i32 = arith.constant 0 : i32
    %0 = arith.cmpi eq, %arg1, %c0_i32 : i32
    %1 = arith.extui %0 : i1 to i32
    %c0_i32_0 = arith.constant 0 : i32
    %2 = arith.cmpi ne, %1, %c0_i32_0 : i32
    scf.if %2 {
      %c0_10 = arith.constant 0 : index
      %c0_11 = arith.constant 0 : index
      %c0_12 = arith.constant 0 : index
      %36 = vector.load %arg2[%c0_10, %c0_11, %c0_12] : memref<1x8x32xbf16, #tpu.memory_space<vmem>>, vector<1x8x32xbf16>
      %37 = vector.shape_cast %36 : vector<1x8x32xbf16> to vector<8x32xbf16>
      %c0_13 = arith.constant 0 : index
      %c0_14 = arith.constant 0 : index
      %38 = vector.load %arg3[%c0_13, %c0_14] : memref<32x1536xbf16, #tpu.memory_space<vmem>>, vector<32x1536xbf16>
      %cst_15 = arith.constant dense<0.000000e+00> : vector<8x1536xf32>
      %39 = tpu.matmul %37, %38, %cst_15 {dimension_numbers = #tpu.dot_dimension_numbers<[1], [0], [0], [1], [0, 0, 1, 1], [], []>} : vector<8x32xbf16>, vector<32x1536xbf16>, vector<8x1536xf32> -> vector<8x1536xf32>
      %c0_16 = arith.constant 0 : index
      %c0_17 = arith.constant 0 : index
      %40 = vector.load %arg4[%c0_16, %c0_17] : memref<1x1536xf32, #tpu.memory_space<vmem>>, vector<1x1536xf32>
      %41 = vector.broadcast %40 : vector<1x1536xf32> to vector<8x1536xf32>
      %42 = arith.addf %39, %41 : vector<8x1536xf32>
      %43 = arith.truncf %42 : vector<8x1536xf32> to vector<8x1536xbf16>
      %c0_18 = arith.constant 0 : index
      %c0_19 = arith.constant 0 : index
      %44 = vector.load %arg8[%c0_18, %c0_19] : memref<8x1536xbf16, #tpu.memory_space<vmem>>, vector<8x1536xbf16>
      tpu.vector_store %arg8[%c0_18, %c0_19], %43 {strides = array<i32>} : memref<8x1536xbf16, #tpu.memory_space<vmem>>, vector<8x1536xbf16>,
    } else {
    }
    %c128_i32 = arith.constant 128 : i32
    %3 = arith.muli %arg1, %c128_i32 : i32
    %4 = tpu.assume_multiple %3, 128 : i32
    %c128_i32_1 = arith.constant 128 : i32
    %5 = arith.muli %arg1, %c128_i32_1 : i32
    %c512_i32 = arith.constant 512 : i32
    %6 = arith.addi %c512_i32, %5 : i32
    %7 = tpu.assume_multiple %6, 128 : i32
    %c128_i32_2 = arith.constant 128 : i32
    %8 = arith.muli %arg1, %c128_i32_2 : i32
    %c1024_i32 = arith.constant 1024 : i32
    %9 = arith.addi %c1024_i32, %8 : i32
    %10 = tpu.assume_multiple %9, 128 : i32
    %c0 = arith.constant 0 : index
    %11 = arith.index_cast %4 : i32 to index
    %12 = vector.load %arg8[%c0, %11] : memref<8x1536xbf16, #tpu.memory_space<vmem>>, vector<8x128xbf16>
    %c0_3 = arith.constant 0 : index
    %13 = arith.index_cast %7 : i32 to index
    %14 = vector.load %arg8[%c0_3, %13] : memref<8x1536xbf16, #tpu.memory_space<vmem>>, vector<8x128xbf16>
    %c0_4 = arith.constant 0 : index
    %15 = arith.index_cast %10 : i32 to index
    %16 = vector.load %arg8[%c0_4, %15] : memref<8x1536xbf16, #tpu.memory_space<vmem>>, vector<8x128xbf16>
    %cst = arith.constant dense<0.000000e+00> : vector<8x8xf32>
    %17 = tpu.matmul %12, %14, %cst {dimension_numbers = #tpu.dot_dimension_numbers<[1], [1], [0], [0], [0, 0, 1, 0], [], []>} : vector<8x128xbf16>, vector<8x128xbf16>, vector<8x8xf32> -> vector<8x8xf32>
    %cst_5 = arith.constant dense<0xFF800000> : vector<8xf32>
    %18 = vector.multi_reduction <maximumf>, %17, %cst_5 [1] : vector<8x8xf32> to vector<8xf32>
    %19 = vector.shape_cast %18 : vector<8xf32> to vector<8x1xf32>
    %20 = vector.broadcast %19 : vector<8x1xf32> to vector<8x8xf32>
    %21 = arith.subf %17, %20 : vector<8x8xf32>
    %22 = math.exp %21 : vector<8x8xf32>
    %cst_6 = arith.constant dense<0.000000e+00> : vector<8xf32>
    %23 = vector.multi_reduction <add>, %22, %cst_6 [1] : vector<8x8xf32> to vector<8xf32>
    %24 = vector.shape_cast %23 : vector<8xf32> to vector<8x1xf32>
    %25 = arith.truncf %22 : vector<8x8xf32> to vector<8x8xbf16>
    %cst_7 = arith.constant dense<0.000000e+00> : vector<8x128xf32>
    %26 = tpu.matmul %25, %16, %cst_7 {dimension_numbers = #tpu.dot_dimension_numbers<[1], [0], [0], [1], [0, 0, 1, 1], [], []>} : vector<8x8xbf16>, vector<8x128xbf16>, vector<8x128xf32> -> vector<8x128xf32>
    %27 = tpu.reciprocal %24 {approx = true} : vector<8x1xf32> -> vector<8x1xf32>
    %28 = vector.broadcast %27 : vector<8x1xf32> to vector<8x128xf32>
    %29 = arith.mulf %26, %28 : vector<8x128xf32>
    %30 = arith.truncf %29 : vector<8x128xf32> to vector<8x128xbf16>
    %c0_8 = arith.constant 0 : index
    %31 = arith.index_cast %4 : i32 to index
    %32 = vector.load %arg9[%c0_8, %31] : memref<8x512xbf16, #tpu.memory_space<vmem>>, vector<8x128xbf16>
    tpu.vector_store %arg9[%c0_8, %31], %30 {strides = array<i32>} : memref<8x512xbf16, #tpu.memory_space<vmem>>, vector<8x128xbf16>,
    %c3_i32 = arith.constant 3 : i32
    %33 = arith.cmpi eq, %arg1, %c3_i32 : i32
    %34 = arith.extui %33 : i1 to i32
    %c0_i32_9 = arith.constant 0 : i32
    %35 = arith.cmpi ne, %34, %c0_i32_9 : i32
    scf.if %35 {
      %c0_10 = arith.constant 0 : index
      %c0_11 = arith.constant 0 : index
      %36 = vector.load %arg9[%c0_10, %c0_11] : memref<8x512xbf16, #tpu.memory_space<vmem>>, vector<8x512xbf16>
      %c0_12 = arith.constant 0 : index
      %c0_13 = arith.constant 0 : index
      %37 = vector.load %arg5[%c0_12, %c0_13] : memref<512x32xbf16, #tpu.memory_space<vmem>>, vector<512x32xbf16>
      %cst_14 = arith.constant dense<0.000000e+00> : vector<8x32xf32>
      %38 = tpu.matmul %36, %37, %cst_14 {dimension_numbers = #tpu.dot_dimension_numbers<[1], [0], [0], [1], [0, 0, 1, 1], [], []>} : vector<8x512xbf16>, vector<512x32xbf16>, vector<8x32xf32> -> vector<8x32xf32>
      %c0_15 = arith.constant 0 : index
      %c0_16 = arith.constant 0 : index
      %39 = vector.load %arg6[%c0_15, %c0_16] : memref<1x32xf32, #tpu.memory_space<vmem>>, vector<1x32xf32>
      %40 = vector.broadcast %39 : vector<1x32xf32> to vector<8x32xf32>
      %41 = arith.addf %38, %40 : vector<8x32xf32>
      %c0_17 = arith.constant 0 : index
      %c0_18 = arith.constant 0 : index
      %c0_19 = arith.constant 0 : index
      %42 = vector.load %arg7[%c0_17, %c0_18, %c0_19] : memref<1x8x32xf32, #tpu.memory_space<vmem>>, vector<1x8x32xf32>
      %43 = vector.shape_cast %42 : vector<1x8x32xf32> to vector<8x32xf32>
      %44 = vector.shape_cast %41 : vector<8x32xf32> to vector<1x8x32xf32>
      tpu.vector_store %arg7[%c0_17, %c0_18, %c0_19], %44 {strides = array<i32>} : memref<1x8x32xf32, #tpu.memory_space<vmem>>, vector<1x8x32xf32>,
    } else {
    }
    return
  }
  func.func @transform_0(%arg0: i32, %arg1: i32) -> (i32, i32, i32) {
    %c0_i32 = arith.constant 0 : i32
    %c0_i32_0 = arith.constant 0 : i32
    %c0_i32_1 = arith.constant 0 : i32
    return %arg0, %c0_i32, %c0_i32_0 : i32, i32, i32
  }
  func.func @transform_1(%arg0: i32, %arg1: i32) -> (i32, i32) {
    %c0_i32 = arith.constant 0 : i32
    %c0_i32_0 = arith.constant 0 : i32
    %c0_i32_1 = arith.constant 0 : i32
    return %c0_i32, %c0_i32_0 : i32, i32
  }
  func.func @transform_2(%arg0: i32, %arg1: i32) -> (i32, i32) {
    %c0_i32 = arith.constant 0 : i32
    %c0_i32_0 = arith.constant 0 : i32
    %c0_i32_1 = arith.constant 0 : i32
    return %c0_i32, %c0_i32_0 : i32, i32
  }
  func.func @transform_3(%arg0: i32, %arg1: i32) -> (i32, i32) {
    %c0_i32 = arith.constant 0 : i32
    %c0_i32_0 = arith.constant 0 : i32
    %c0_i32_1 = arith.constant 0 : i32
    return %c0_i32, %c0_i32_0 : i32, i32
  }
  func.func @transform_4(%arg0: i32, %arg1: i32) -> (i32, i32) {
    %c0_i32 = arith.constant 0 : i32
    %c0_i32_0 = arith.constant 0 : i32
    %c0_i32_1 = arith.constant 0 : i32
    return %c0_i32, %c0_i32_0 : i32, i32
  }
  func.func @transform_5(%arg0: i32, %arg1: i32) -> (i32, i32, i32) {
    %c0_i32 = arith.constant 0 : i32
    %c0_i32_0 = arith.constant 0 : i32
    %c0_i32_1 = arith.constant 0 : i32
    return %arg0, %c0_i32, %c0_i32_0 : i32, i32, i32
  }
}

</mosaic_0001>

<bundles_post_ra>
// kernel: tpu_custom_call.1
= control target key start
LH: loop header
LB: loop body
LE: loop exit
PB: predicated region body
PF: predicated region fallthrough
CT: control target
= control target key end

     0   :  { %s2441_s0 = inlined_call_operand.hbm [shape: bf16[2,8,32], index: 0, kind: input, shape index: {}]   ;;  %s2442_s1 = inlined_call_operand.hbm [shape: bf16[32,1536], index: 1, kind: input, shape index: {}]   ;;  %s2443_s2 = inlined_call_operand.hbm [shape: f32[1,1536], index: 2, kind: input, shape index: {}]   ;;  %s2444_s3 = inlined_call_operand.hbm [shape: bf16[512,32], index: 3, kind: input, shape index: {}]   ;;  %s2445_s4 = inlined_call_operand.hbm [shape: f32[1,32], index: 4, kind: input, shape index: {}]   ;;  %s2446_s5 = inlined_call_operand.hbm [shape: f32[2,8,32], index: 5, kind: output, shape index: {}]  }
   0x1   :  { %2452 = sst [smem:[#allocation18_spill]] %s2442_s1 }
   0x2   :  { %2453 = sst [smem:[#allocation19_spill]] %s2443_s2 }
   0x3   :  { %2454 = sst [smem:[#allocation20_spill]] %s2444_s3 }
   0x4   :  { %10 = vsyncpa [#allocation5], 0 }
   0x5   :  { %12 = vsyncpa [#allocation5 + $0x1], 0 }
   0x6   :  { %13 = vsyncpa [#allocation8], 0 }
   0x7   :  { %14 = vsyncpa [#allocation11], 0 }
   0x8   :  { %15 = vsyncpa [#allocation6], 0 }
   0x9   :  { %17 = vsyncpa [#allocation6 + $0x1], 0  ;;  %s2115_s18 = smov 0   ;;  %s2117_s19 = smov 0  }
   0xa   :  { %s2119_s20 = smov 0   ;;  %s2121_s21 = smov 0  }
   0xb   :  { %s2123_s22 = smov 0   ;;  %s2125_s23 = smov 0  }
   0xc   :  { %s2127_s24 = smov 0   ;;  %s2129_s25 = smov 0  }
   0xd LB: > { %s2450_s26 = sadd.s32 4294967295, %s2070_s25   ;;  %p1454_p0 = scmp.ge.s32.totalorder %s2070_s25, 1  ;;  %s2070_s25 = sphi %s2129_s25, %s23_s25   ;;  %s2066_s24 = sphi %s2127_s24, %s2479_s24   ;;  %s2062_s23 = sphi %s2125_s23, %s2478_s23   ;;  %s2058_s22 = sphi %s2123_s22, %s2477_s22   ;;  %s2054_s21 = sphi %s2121_s21, %s2476_s21   ;;  %s2050_s20 = sphi %s2119_s20, %s2475_s20   ;;  %s2046_s19 = sphi %s2117_s19, %s2474_s19   ;;  %s2042_s18 = sphi %s2115_s18, %s2473_s18  }
   0xe   : > { %p2159_p1 = scmp.eq.s32.totalorder %s2450_s26, 0  ;;  %p176_p2 = scmp.lt.s32.totalorder %s2070_s25, 9 }
   0xf   : > { %s2072_s29 = smov [#allocation7]   ;;  %s2073_s7 = smov [#allocation10]  }
  0x10   : > { %s2455_s27 = scalar_select %p2159_p1, 1, 0 }
  0x11   : > { %p2164_p3 = pnand %p1454_p0, %p176_p2  ;;  %s188_s30 = sshll.u32 %s2072_s29, 4  ;;  %s189_s30 = int_to_ptr.vmem [resolvable:$true] %s188_s30 }
  0x12   : > { %s212_s8 = sshll.u32 %s2073_s7, 4  ;;  %s2458_s1 = sld [smem:[#allocation18_spill]]  ;;  %s2176_s8 = int_to_ptr.vmem [resolvable:$true] %s212_s8 }
  0x13   : > { %s2456_s28 = scalar_select %p2164_p3, 1, 0 }
  0x14   : > { %p1640_p4 = pneg %p2164_p3 }
  0x16   : > { %p2172_p5 = pnand %p1640_p4, %p2159_p1 }
  0x18   : > { %s1822_s11 = scalar_lea.hbm %s2458_s1, 3072  ;;  %p2186_p7 = pneg %p2172_p5 }
  0x19   : > { %p1823_p6 = scmp.ne.s32.totalorder %s2458_s1, %s1822_s11  ;;  %p1829_p10 = scmp.lt.u32.totalorder %s1822_s11, %s2458_s1 }
  0x1b   : > { %p1825_p8 = pnand %p2186_p7, %p1823_p6 }
  0x1d   : > { %p1826_p9 = pneg %p1825_p8 }
  0x1f   : > { %p1831_p11 = pnand %p1829_p10, %p1826_p9 }
  0x21   : > { %1834 = shalt.err (!%p1831_p11)
}
  0x22   : > { %s1835_s17 = scalar_lea.vmem %s189_s30, 3072  ;;  %p1843_p2 = scmp.lt.s32.totalorder %s189_s30, %s189_s30 }
  0x23   : > { %p1836_p12 = scmp.ne.s32.totalorder %s189_s30, %s1835_s17  ;;  %p1844_p4 = scmp.lt.s32.totalorder %s1835_s17, %s1835_s17 }
  0x25   : > { %p1838_p13 = pnand %p1836_p12, %p2186_p7  ;;  %p1845_p3 = por %p1844_p4, %p1843_p2 }
  0x27   : > { %p1839_p0 = pneg %p1838_p13 }
  0x29   : > { %p1846_p1 = pnand %p1845_p3, %p1839_p0 }
  0x2b   : > { %1849 = shalt.err (!%p1846_p1)
}
  0x2c   : > { %s2074_s29 = smov 768   ;;  %s2075_s7 = smov 48  }
  0x2d   : > { %1643 = dma.hbm_to_vmem [thread:$0]  (!%p2172_p5), %s2458_s1, 3072, %s189_s30, [#allocation8], %s2074_s29, %s2074_s29, %s2075_s7  }
  0x2e   : > { %s2460_s3 = sld [smem:[#allocation20_spill]] }
  0x34   : > { %s1850_s13 = scalar_lea.hbm %s2460_s3, 4096 }
  0x35   : > { %p1851_p6 = scmp.ne.s32.totalorder %s2460_s3, %s1850_s13  ;;  %p1857_p8 = scmp.lt.u32.totalorder %s1850_s13, %s2460_s3 }
  0x37   : > { %p1853_p3 = pnand %p1851_p6, %p2186_p7 }
  0x39   : > { %p1854_p1 = pneg %p1853_p3 }
  0x3b   : > { %p1859_p9 = pnand %p1857_p8, %p1854_p1 }
  0x3d   : > { %1862 = shalt.err (!%p1859_p9)
}
  0x3e   : > { %s1863_s30 = scalar_lea.vmem %s2176_s8, 4096  ;;  %p1871_p13 = scmp.lt.s32.totalorder %s2176_s8, %s2176_s8 }
  0x3f   : > { %p1864_p10 = scmp.ne.s32.totalorder %s2176_s8, %s1863_s30  ;;  %p1872_p0 = scmp.lt.s32.totalorder %s1863_s30, %s1863_s30 }
  0x41   : > { %p1866_p11 = pnand %p1864_p10, %p2186_p7  ;;  %p1873_p2 = por %p1872_p0, %p1871_p13 }
  0x43   : > { %p1867_p12 = pneg %p1866_p11 }
  0x45   : > { %p1874_p4 = pnand %p1873_p2, %p1867_p12 }
  0x47   : > { %1877 = shalt.err (!%p1874_p4)
}
  0x48   : > { %s2076_s29 = smov 64   ;;  %s2077_s26 = smov 4  }
  0x49   : > { %1649 = dma.hbm_to_vmem [thread:$0]  (!%p2172_p5), %s2460_s3, 4096, %s2176_s8, [#allocation11], %s2076_s29, %s2076_s29, %s2077_s26  }
  0x4a   : > { %s2078_s10 = smov [#allocation9]   ;;  %s2079_s12 = smov [#allocation12]  }
  0x4b   : > { %s202_s11 = sshll.u32 %s2078_s10, 4  ;;  %s226_s13 = sshll.u32 %s2079_s12, 4  ;;  %s203_s11 = int_to_ptr.vmem [resolvable:$true] %s202_s11  ;;  %s2225_s13 = int_to_ptr.vmem [resolvable:$true] %s226_s13 }
  0x4c   : > { %s2461_s2 = sld [smem:[#allocation19_spill]] }
  0x52   : > { %s1878_s17 = scalar_lea.hbm %s2461_s2, 192 }
  0x53   : > { %p1879_p6 = scmp.ne.s32.totalorder %s2461_s2, %s1878_s17  ;;  %p1885_p8 = scmp.lt.u32.totalorder %s1878_s17, %s2461_s2 }
  0x55   : > { %p1881_p3 = pnand %p1879_p6, %p2186_p7 }
  0x57   : > { %p1882_p1 = pneg %p1881_p3 }
  0x59   : > { %p1887_p9 = pnand %p1885_p8, %p1882_p1 }
  0x5b   : > { %1890 = shalt.err (!%p1887_p9)
}
  0x5c   : > { %s1891_s29 = scalar_lea.vmem %s203_s11, 192  ;;  %p1899_p13 = scmp.lt.s32.totalorder %s203_s11, %s203_s11 }
  0x5d   : > { %p1892_p10 = scmp.ne.s32.totalorder %s203_s11, %s1891_s29  ;;  %p1900_p0 = scmp.lt.s32.totalorder %s1891_s29, %s1891_s29 }
  0x5f   : > { %p1894_p11 = pnand %p1892_p10, %p2186_p7  ;;  %p1901_p2 = por %p1900_p0, %p1899_p13 }
  0x61   : > { %p1895_p12 = pneg %p1894_p11 }
  0x63   : > { %p1902_p4 = pnand %p1901_p2, %p1895_p12 }
  0x65   : > { %1905 = shalt.err (!%p1902_p4)
}
  0x66   : > { %1646 = dma.hbm_to_vmem [thread:$0]  (!%p2172_p5), %s2461_s2, 192, %s203_s11, [#allocation8]  }
  0x67   : > { %s1906_s12 = scalar_lea.hbm %s2445_s4, 16 }
  0x68   : > { %p1907_p6 = scmp.ne.s32.totalorder %s2445_s4, %s1906_s12  ;;  %p1913_p8 = scmp.lt.u32.totalorder %s1906_s12, %s2445_s4 }
  0x6a   : > { %p1909_p3 = pnand %p1907_p6, %p2186_p7 }
  0x6c   : > { %p1910_p1 = pneg %p1909_p3 }
  0x6e   : > { %p1915_p9 = pnand %p1913_p8, %p1910_p1 }
  0x70   : > { %1918 = shalt.err (!%p1915_p9)
}
  0x71   : > { %s1919_s11 = scalar_lea.vmem %s2225_s13, 16  ;;  %s1926_s7 = scalar_lea.vmem %s2225_s13, 32 }
  0x72   : > { %p1920_p10 = scmp.ne.s32.totalorder %s2225_s13, %s1919_s11  ;;  %p1927_p13 = scmp.lt.s32.totalorder %s2225_s13, %s2225_s13 }
  0x73   : > { %p1928_p0 = scmp.lt.s32.totalorder %s1926_s7, %s1919_s11 }
  0x74   : > { %p1922_p11 = pnand %p1920_p10, %p2186_p7 }
  0x75   : > { %p1929_p2 = por %p1928_p0, %p1927_p13 }
  0x76   : > { %p1923_p12 = pneg %p1922_p11 }
  0x78   : > { %p1930_p4 = pnand %p1929_p2, %p1923_p12 }
  0x7a   : > { %1933 = shalt.err (!%p1930_p4)
}
  0x7b   : > { %1652 = dma.hbm_to_vmem [thread:$0]  (!%p2172_p5), %s2445_s4, 16, %s2225_s13, [#allocation11]  }
  0x7c   : > { %s1453_s14 = sadd.s32 4294967294, %s2070_s25   ;;  %s32_s1 = sadd.s32 1, %s2062_s23 }
  0x7d   : > { %p33_p7 = scmp.ge.s32.totalorder %s32_s1, 4  ;;  %s35_s6 = sadd.s32 1, %s2066_s24 }
  0x7e   : > { %s42_s26 = sadd.s32 1, %s2050_s20  ;;  %p49_p6 = scmp.ne.s32.totalorder %s2050_s20, %s2046_s19 }
  0x7f   : > { %s2481_s1 = smov (%p33_p7, %s32_s1), 0  ;;  %s2483_s6 = smov (!%p33_p7, %s35_s6), %s2066_s24 }
  0x80   : > { %p50_p3 = scmp.eq.s32.totalorder %s2070_s25, 0  ;;  %p55_p1 = scmp.ne.s32.totalorder %s2046_s19, %s2042_s18 }
  0x81   : > { %p37_p8 = scmp.ge.s32.totalorder %s2483_s6, 2  ;;  %s2462_s9 = sadd.s32 4294967295, %s2070_s25  }
  0x82   : > { %p163_p9 = scmp.eq.s32.totalorder %s2462_s9, 7  ;;  %p2283_p5 = por %p50_p3, %p49_p6 }
  0x83   : > { %p2464_p10 = scmp.ne.s32.totalorder %s2455_s27, 0  ;;  %s2485_s6 = smov (%p37_p8, %s2483_s6), 0 }
  0x84   : > { %p2295_p12 = por %p163_p9, %p49_p6  ;;  %p169_p13 = scmp.eq.s32.totalorder %s1453_s14, 7 }
  0x85   : > { %p2289_p11 = por %p2464_p10, %p55_p1  ;;  %s39_s15 = ssub.s32 %s2066_s24, %s2485_s6 }
  0x86   : > { %s2466_s12 = scalar_select %p2295_p12, 1, 0 }
  0x87   : > { %p1665_p0 = scmp.lt.s32.totalorder %s2070_s25, 8  ;;  %p40_p2 = scmp.eq.s32.totalorder %s39_s15, 0 }
  0x88   : > { %p2302_p4 = por %p169_p13, %p55_p1  ;;  %s237_s17 = sand.u32 1, %s2050_s20  }
  0x89   : > { %s1461_s30 = sshll.u32 %s2066_s24, 6  ;;  %s1460_s7 = sshll.u32 %s237_s17, 2 }
  0x8a   : > { %s2467_s16 = scalar_select %p2302_p4, 1, 0 }
  0x8b   : > { %s2309_s11 = scalar_select %p40_p2, %s2050_s20, %s42_s26  }
  0x8c   : > { %s2314_s9 = scalar_lea.hbm %s2441_s0, %s1461_s30  ;;  %s241_s14 = scalar_lea.vmem [#allocation4], %s1460_s7 }
  0x8d   : > { %s248_s15 = sshll.u32 %s241_s14, 4  ;;  %p2318_p7 = pnand %p1665_p0, %p2283_p5  ;;  %s2322_s15 = int_to_ptr.vmem [resolvable:$true] %s248_s15 }
  0x8e   : > { %s238_s26 = scalar_lea.sflag [#allocation5], %s237_s17  ;;  %s1934_s3 = scalar_lea.hbm %s2314_s9, 64 }
  0x8f   : > { %p1935_p6 = scmp.ne.s32.totalorder %s2314_s9, %s1934_s3  ;;  %p1936_p3 = pneg %p2318_p7 }
  0x90   : > { %s1939_s13 = scalar_lea.hbm %s2441_s0, 128  ;;  %p1940_p9 = scmp.lt.u32.totalorder %s2314_s9, %s2441_s0 }
  0x91   : > { %p1937_p1 = pnand %p1936_p3, %p1935_p6  ;;  %p1941_p5 = scmp.lt.u32.totalorder %s1939_s13, %s1934_s3 }
  0x92   : > { %p1943_p13 = scmp.lt.u32.totalorder %s1934_s3, %s2314_s9 }
  0x93   : > { %p1938_p8 = pneg %p1937_p1  ;;  %p1942_p10 = por %p1941_p5, %p1940_p9 }
  0x95   : > { %p1944_p0 = por %p1943_p13, %p1942_p10 }
  0x97   : > { %p1945_p2 = pnand %p1944_p0, %p1938_p8 }
  0x99   : > { %1948 = shalt.err (!%p1945_p2)
}
  0x9a   : > { %s1949_s17 = scalar_lea.vmem %s2322_s15, 64  ;;  %s2080_s14 = smov [#allocation4]  }
  0x9b   : > { %p1950_p6 = scmp.ne.s32.totalorder %s2322_s15, %s1949_s17  ;;  %s1954_s30 = sshll.u32 %s2080_s14, 4  ;;  %s1955_s30 = int_to_ptr.vmem [resolvable:$false] %s1954_s30 }
  0x9c   : > { %s1956_s7 = scalar_lea.vmem %s1955_s30, 128  ;;  %p1957_p12 = scmp.lt.s32.totalorder %s2322_s15, %s1955_s30 }
  0x9d   : > { %p1952_p1 = pnand %p1950_p6, %p1936_p3  ;;  %p1958_p9 = scmp.lt.s32.totalorder %s1956_s7, %s1949_s17 }
  0x9f   : > { %p1953_p4 = pneg %p1952_p1  ;;  %p1959_p5 = por %p1958_p9, %p1957_p12 }
  0xa1   : > { %p1960_p10 = pnand %p1959_p5, %p1953_p4 }
  0xa3   : > { %1963 = shalt.err (!%p1960_p10)
}
  0xa4   : > { %1656 = dma.hbm_to_vmem [thread:$0]  (!%p2318_p7), %s2314_s9, 64, %s2322_s15, %s238_s26  }
  0xa5   : > { %p2469_p8 = scmp.ne.s32.totalorder %s2456_s28, 0 }
  0xa6   : > { %s2352_s3 = sand.u32 (!%p2469_p8), 1, %s2046_s19  }
  0xa7   : > { %257 = sbr.rel (%p2469_p8) target bundleno = 1283 (0x503), region = 40  ;;  %s1463_s13 = sshll.u32 (!%p2469_p8), %s2352_s3, 2 }
  0xa8   : > { %s260_s8 = scalar_lea.sflag (!%p2469_p8), [#allocation5], %s2352_s3  ;;  %s263_s29 = scalar_lea.vmem (!%p2469_p8), [#allocation4], %s1463_s13 }
  0xae   : > { %2025 = dma.done.wait (%p2289_p11), %s260_s8, 64  }
  0xaf   : > { %2027 = vsyncadd (%p2289_p11), %s260_s8, 4294967232  ;;  %p2470_p12 = scmp.ne.s32.totalorder %s2455_s27, 0 }
  0xb1   : > { %2029 = dma.done.wait (%p2470_p12), [#allocation8], 3264  }
  0xb2   : > { %2031 = vsyncadd (%p2470_p12), [#allocation8], 4294964032 }
  0xb3   : > { %2033 = dma.done.wait (%p2470_p12), [#allocation11], 4112  }
  0xb4   : > { %2035 = vsyncadd (%p2470_p12), [#allocation11], 4294963184  ;;  %s1468_s2 = sshll.u32 %s2352_s3, 3  ;;  %p1469_p4 = scmp.ne.s32.totalorder %s2054_s21, 0 }
  0xb5   : > { %s2369_s28 = scalar_lea.vmem [#allocation13], %s1468_s2  ;;  %v1746_v0 = vld [vmem:[#allocation7 + $0x4] ss:$48 sps:$4 sm:$0xff] (!%p1469_p4)   ;;  %v1748_v1 = vld [vmem:[#allocation7 + $0xc] ss:$48 sps:$4 sm:$0xff] (!%p1469_p4)   ;;  %v2081_v2 = vmov (!%p1469_p4), 0   ;;  %v340_v26 = vlaneseq (!%p1469_p4) }
  0xb6   : > { %310 = sbr.rel (%p1469_p4) target bundleno = 425 (0x1a9), region = 64  ;;  %556 = vmatprep.mubr.bf16.mxu0 (!%p1469_p4), %v2081_v2  ;;  %597 = vmatprep.mubr.bf16.mxu1 (!%p1469_p4), %v2081_v2  ;;  %v1750_v3 = vld [vmem:[#allocation7] ss:$48 sps:$4 sm:$0xff] (!%p1469_p4)   ;;  %v1751_v4 = vld [vmem:[#allocation7 + $0x8] ss:$48 sps:$4 sm:$0xff] (!%p1469_p4)   ;;  %vm520_vm0 = vcmask (!%p1469_p4), 261120  }
  0xb7   : > { %524 = vmatprep.subr.bf16.mxu0 (!%p1469_p4), %v1746_v0  ;;  %565 = vmatprep.subr.bf16.mxu1 (!%p1469_p4), %v1748_v1  ;;  %v1752_v5 = vld [vmem:[#allocation7 + $0x64] ss:$48 sps:$4 sm:$0xff] (!%p1469_p4)   ;;  %v1754_v6 = vld [vmem:[#allocation7 + $0x6c] ss:$48 sps:$4 sm:$0xff] (!%p1469_p4)   ;;  %v1756_v7 = vld [vmem:[#allocation7 + $0x60] ss:$48 sps:$4 sm:$0xff] (!%p1469_p4)  }
  0xb8   : > { %525 = vmatpush1.bf16.msra.mxu0 (!%p1469_p4), %v1750_v3  ;;  %566 = vmatpush1.bf16.msra.mxu1 (!%p1469_p4), %v1751_v4  ;;  %v1757_v8 = vld [vmem:[#allocation7 + $0x68] ss:$48 sps:$4 sm:$0xff] (!%p1469_p4)   ;;  %v1758_v10 = vld [vmem:[#allocation7 + $0x10] ss:$48 sps:$4 sm:$0xff] (!%p1469_p4)   ;;  %v1760_v11 = vld [vmem:[#allocation7 + $0x14] ss:$48 sps:$4 sm:$0xff] (!%p1469_p4)  }
  0xb9   : > { %526 = vmatprep.subr.bf16.mxu0 (!%p1469_p4), %v1752_v5  ;;  %567 = vmatprep.subr.bf16.mxu1 (!%p1469_p4), %v1754_v6  ;;  %v311_v9 = vld [vmem:[%s263_s29] sm:$0xf] (!%p1469_p4)  ;;  %v1766_v14 = vld [vmem:[#allocation7 + $0x74] ss:$48 sps:$4 sm:$0xff] (!%p1469_p4)   ;;  %v1764_v16 = vld [vmem:[#allocation7 + $0x70] ss:$48 sps:$4 sm:$0xff] (!%p1469_p4)  }
  0xba   : > { %v1761_v12 = vld [vmem:[#allocation7 + $0x18] ss:$48 sps:$4 sm:$0xff] (!%p1469_p4)   ;;  %v1763_v13 = vld [vmem:[#allocation7 + $0x1c] ss:$48 sps:$4 sm:$0xff] (!%p1469_p4)   ;;  %v1772_v18 = vld [vmem:[#allocation7 + $0x24] ss:$48 sps:$4 sm:$0xff] (!%p1469_p4)  }
  0xbb   : > { %v1769_v15 = vld [vmem:[#allocation7 + $0x7c] ss:$48 sps:$4 sm:$0xff] (!%p1469_p4)   ;;  %v1767_v17 = vld [vmem:[#allocation7 + $0x78] ss:$48 sps:$4 sm:$0xff] (!%p1469_p4)   ;;  %v1770_v20 = vld [vmem:[#allocation7 + $0x20] ss:$48 sps:$4 sm:$0xff] (!%p1469_p4)  }
  0xbc   : > { %527 = vmatpush1.bf16.msra.mxu0 (!%p1469_p4), %v1756_v7  ;;  %568 = vmatpush1.bf16.msra.mxu1 (!%p1469_p4), %v1757_v8  ;;  %v1775_v19 = vld [vmem:[#allocation7 + $0x2c] ss:$48 sps:$4 sm:$0xff] (!%p1469_p4)   ;;  %v1773_v21 = vld [vmem:[#allocation7 + $0x28] ss:$48 sps:$4 sm:$0xff] (!%p1469_p4)   ;;  %v1778_v22 = vld [vmem:[#allocation7 + $0x84] ss:$48 sps:$4 sm:$0xff] (!%p1469_p4)  }
  0xbd   : > { %606 = vmatprep.subr.bf16.mxu0 %v1760_v11  ;;  %647 = vmatprep.subr.bf16.mxu1 %v1763_v13  ;;  %v1781_v23 = vld [vmem:[#allocation7 + $0x8c] ss:$48 sps:$4 sm:$0xff]   ;;  %v1776_v24 = vld [vmem:[#allocation7 + $0x80] ss:$48 sps:$4 sm:$0xff]   ;;  %v1779_v25 = vld [vmem:[#allocation7 + $0x88] ss:$48 sps:$4 sm:$0xff]  }
  0xbe   : > { %v341_v27 = vshrl.u32 %v340_v26, 7  ;;  %v336_v30 = vld [vmem:[#allocation9] sm:$0xff]  ;;  %v337_v5 = vld [vmem:[#allocation9 + $0x8] sm:$0xf] }
  0xbf   : > { %1494 = vmatmul.mubr.msk.bf16.vlgmr.msra.gmra.mrb[0].mxu0 %vm520_vm0, %v311_v9  ;;  %1495 = vmatmul.mubr.msk.bf16.vlgmr.msra.gmra.mrb[0].mxu1 %vm520_vm0, %v311_v9 }
  0xc0   : > { %607 = vmatpush1.bf16.msra.mxu0 %v1758_v10  ;;  %648 = vmatpush1.bf16.msra.mxu1 %v1761_v12  ;;  %v342_v28 = vsub.s32 0, %v341_v27  ;;  %v350_v29 = vsub.s32 2, %v341_v27  ;;  %v346_v31 = vsub.s32 1, %v341_v27  ;;  %v354_v32 = vsub.s32 3, %v341_v27 }
  0xc1   : > { %608 = vmatprep.subr.bf16.mxu0 %v1766_v14  ;;  %649 = vmatprep.subr.bf16.mxu1 %v1769_v15  ;;  %v358_v43 = vsub.s32 4, %v341_v27  ;;  %v366_v44 = vsub.s32 6, %v341_v27  ;;  %v362_v49 = vsub.s32 5, %v341_v27  ;;  %v370_v50 = vsub.s32 7, %v341_v27 }
  0xc2   : > { %638 = vmatprep.mubr.bf16.mxu0 %v2081_v2  ;;  %679 = vmatprep.mubr.bf16.mxu1 %v2081_v2  ;;  %v343_v33 = vrot.slane %v336_v30, %v342_v28  ;;  %v351_v34 = vrot.slane %v336_v30, %v350_v29  ;;  %v347_v35 = vrot.slane %v336_v30, %v346_v31 }
  0xc3   : > { %v355_v36 = vrot.slane %v336_v30, %v354_v32  ;;  %v359_v55 = vrot.slane %v336_v30, %v358_v43  ;;  %v367_v56 = vrot.slane %v336_v30, %v366_v44  ;;  %v363_v57 = vrot.slane %v336_v30, %v362_v49 }
  0xc4   : > { %609 = vmatpush1.bf16.msra.mxu0 %v1764_v16  ;;  %650 = vmatpush1.bf16.msra.mxu1 %v1767_v17  ;;  %v371_v58 = vrot.slane %v336_v30, %v370_v50  ;;  %v375_v10 = vrot.slane %v337_v5, %v342_v28  ;;  %v383_v11 = vrot.slane %v337_v5, %v350_v29 }
  0xc5   : > { %688 = vmatprep.subr.bf16.mxu0 %v1772_v18  ;;  %729 = vmatprep.subr.bf16.mxu1 %v1775_v19  ;;  %v379_v12 = vrot.slane %v337_v5, %v346_v31  ;;  %v387_v13 = vrot.slane %v337_v5, %v354_v32 }
  0xc7   : > { %1496 = vmatmul.mubr.msk.bf16.vlgmr.msra.gmra.mrb[4].mxu0 %vm520_vm0, %v311_v9  ;;  %1497 = vmatmul.mubr.msk.bf16.vlgmr.msra.gmra.mrb[4].mxu1 %vm520_vm0, %v311_v9 }
  0xc8   : > { %689 = vmatpush1.bf16.msra.mxu0 %v1770_v20  ;;  %730 = vmatpush1.bf16.msra.mxu1 %v1773_v21 }
  0xc9   : > { %690 = vmatprep.subr.bf16.mxu0 %v1778_v22  ;;  %731 = vmatprep.subr.bf16.mxu1 %v1781_v23 }
  0xca   : > { %720 = vmatprep.mubr.bf16.mxu0 %v2081_v2  ;;  %761 = vmatprep.mubr.bf16.mxu1 %v2081_v2 }
  0xcc   : > { %691 = vmatpush1.bf16.msra.mxu0 %v1776_v24  ;;  %732 = vmatpush1.bf16.msra.mxu1 %v1779_v25 }
  0xcf   : > { %1498 = vmatmul.mubr.msk.bf16.vlgmr.msra.gmra.mrb[8].mxu0 %vm520_vm0, %v311_v9  ;;  %1499 = vmatmul.mubr.msk.bf16.vlgmr.msra.gmra.mrb[8].mxu1 %vm520_vm0, %v311_v9 }
 0x192   : > { %v558_v37 = vpop.f32.mrb[0].mxu0  ;;  %v599_v38 = vpop.f32.mrb[0].mxu1 }
 0x193   : > { %v559_v39 = vadd.f32 %v558_v37, %v343_v33  ;;  %v600_v40 = vadd.f32 %v599_v38, %v351_v34  ;;  %v560_v41 = vpop.f32.mrb[1].mxu0  ;;  %v601_v42 = vpop.f32.mrb[1].mxu1 }
 0x194   : > { %v561_v45 = vadd.f32 %v560_v41, %v347_v35  ;;  %v602_v46 = vadd.f32 %v601_v42, %v355_v36  ;;  %v562_v47 = vpop.f32.mrb[2].mxu0  ;;  %v603_v48 = vpop.f32.mrb[2].mxu1 }
 0x195   : > { %v563_v51 = vpop.f32.mrb[3].mxu0  ;;  %v604_v52 = vpop.f32.mrb[3].mxu1 }
 0x196   : > { %v1554_v53 = vpack.c.bf16 %v561_v45, %v559_v39  ;;  %v1555_v54 = vpack.c.bf16 %v602_v46, %v600_v40 }
 0x198   : > { %818 = vst [vmem:[#allocation2] sm:$0xff] %v1554_v53  ;;  %819 = vst [vmem:[#allocation2 + $0x8] sm:$0xff] %v1555_v54 }
 0x19a   : > { %v640_v59 = vpop.f32.mrb[4].mxu0  ;;  %v681_v60 = vpop.f32.mrb[4].mxu1 }
 0x19b   : > { %v641_v61 = vadd.f32 %v640_v59, %v359_v55  ;;  %v682_v62 = vadd.f32 %v681_v60, %v367_v56  ;;  %v642_v63 = vpop.f32.mrb[5].mxu0  ;;  %v683_v0 = vpop.f32.mrb[5].mxu1 }
 0x19c   : > { %v643_v1 = vadd.f32 %v642_v63, %v363_v57  ;;  %v684_v2 = vadd.f32 %v683_v0, %v371_v58  ;;  %v644_v3 = vpop.f32.mrb[6].mxu0  ;;  %v685_v4 = vpop.f32.mrb[6].mxu1 }
 0x19d   : > { %v645_v6 = vpop.f32.mrb[7].mxu0  ;;  %v686_v7 = vpop.f32.mrb[7].mxu1 }
 0x19e   : > { %v1556_v8 = vpack.c.bf16 %v643_v1, %v641_v61  ;;  %v1557_v9 = vpack.c.bf16 %v684_v2, %v682_v62 }
 0x1a0   : > { %820 = vst [vmem:[#allocation2 + $0x10] sm:$0xff] %v1556_v8  ;;  %821 = vst [vmem:[#allocation2 + $0x18] sm:$0xff] %v1557_v9 }
 0x1a2   : > { %v722_v14 = vpop.f32.mrb[8].mxu0  ;;  %v763_v15 = vpop.f32.mrb[8].mxu1 }
 0x1a3   : > { %v723_v16 = vadd.f32 %v722_v14, %v375_v10  ;;  %v764_v17 = vadd.f32 %v763_v15, %v383_v11  ;;  %v724_v18 = vpop.f32.mrb[9].mxu0  ;;  %v765_v19 = vpop.f32.mrb[9].mxu1 }
 0x1a4   : > { %v725_v20 = vadd.f32 %v724_v18, %v379_v12  ;;  %v766_v21 = vadd.f32 %v765_v19, %v387_v13  ;;  %v726_v22 = vpop.f32.mrb[10].mxu0  ;;  %v767_v23 = vpop.f32.mrb[10].mxu1 }
 0x1a5   : > { %v727_v24 = vpop.f32.mrb[11].mxu0  ;;  %v768_v25 = vpop.f32.mrb[11].mxu1 }
 0x1a6   : > { %v1558_v26 = vpack.c.bf16 %v725_v20, %v723_v16  ;;  %v1559_v27 = vpack.c.bf16 %v766_v21, %v764_v17 }
 0x1a8   : > { %822 = vst [vmem:[#allocation2 + $0x20] sm:$0xff] %v1558_v26  ;;  %823 = vst [vmem:[#allocation2 + $0x28] sm:$0xff] %v1559_v27 }
 0x1a9 PF: > { %s1506_s27 = sshll.u32 %s2054_s21, 7  ;;  %v2082_v28 = vmov 0.0   ;;  %vm2083_vm1 = vmmov 0   ;;  %vm882_vm2 = vcmask 64512   ;;  %vm896_vm3 = vcmask 1043456   ;;  %p1512_p11 = scmp.ne.s32.totalorder %s2054_s21, 3 }
 0x1aa   : > { %1608 = vmatprep.subr.bf16.mxu0 %v2082_v28  ;;  %s825_s10 = sadd.s32 512, %s1506_s27  ;;  %1610 = vmatprep.mubr.msk.bf16.mxu0 %vm2083_vm1, %v2082_v28  ;;  %s827_s9 = sshra.s32 %s1506_s27, 7  ;;  %v1786_v52 = vld [vmem:[#allocation10 + $0x40] sm:$0xff] (!%p1512_p11)   ;;  %v1790_v56 = vld [vmem:[#allocation10 + $0x48] sm:$0xff] (!%p1512_p11)   ;;  %v1794_v60 = vld [vmem:[#allocation10 + $0x50] sm:$0xff] (!%p1512_p11)   ;;  %vm1309_vm4 = vcmask (!%p1512_p11), 261120  }
 0x1ab   : > { %s832_s15 = sshra.s32 %s825_s10, 7  ;;  %1614 = vmatprep.subr.bf16.mxu1 %v2082_v28  ;;  %1616 = vmatprep.mubr.msk.bf16.mxu1 %vm2083_vm1, %v2082_v28  ;;  %s2379_s17 = sshll.u32 %s827_s9, 2  ;;  %v1787_v53 = vld [vmem:[#allocation10 + $0xc0] sm:$0xff] (!%p1512_p11)   ;;  %v1791_v57 = vld [vmem:[#allocation10 + $0xc8] sm:$0xff] (!%p1512_p11)   ;;  %v1795_v61 = vld [vmem:[#allocation10 + $0xd0] sm:$0xff] (!%p1512_p11)  }
 0x1ac   : > { %s1508_s26 = sshll.u32 %s832_s15, 2  ;;  %s830_s30 = scalar_lea.vmem [#allocation2], %s2379_s17  ;;  %v1788_v54 = vld [vmem:[#allocation10] sm:$0xff] (!%p1512_p11)   ;;  %v1792_v58 = vld [vmem:[#allocation10 + $0x8] sm:$0xff] (!%p1512_p11)   ;;  %v1796_v62 = vld [vmem:[#allocation10 + $0x10] sm:$0xff] (!%p1512_p11)  }
 0x1ad   : > { %s835_s14 = scalar_lea.vmem [#allocation2], %s1508_s26  ;;  %s826_s7 = sadd.s32 1024, %s1506_s27  ;;  %v1789_v55 = vld [vmem:[#allocation10 + $0x80] sm:$0xff] (!%p1512_p11)   ;;  %v1793_v59 = vld [vmem:[#allocation10 + $0x88] sm:$0xff] (!%p1512_p11)   ;;  %v1797_v63 = vld [vmem:[#allocation10 + $0x90] sm:$0xff] (!%p1512_p11)  }
 0x1ae   : > { %s837_s13 = sshra.s32 %s826_s7, 7  ;;  %s944_s2 = scalar_lea.vmem [#allocation3], %s2379_s17  ;;  %v1798_v0 = vld [vmem:[#allocation10 + $0x58] sm:$0xff] (!%p1512_p11)   ;;  %v1802_v4 = vld [vmem:[#allocation10 + $0x60] sm:$0xff] (!%p1512_p11)   ;;  %v1806_v8 = vld [vmem:[#allocation10 + $0x68] sm:$0xff] (!%p1512_p11)  }
 0x1af   : > { %v836_v29 = vld [vmem:[%s835_s14] sm:$0xf]  ;;  %s1509_s8 = sshll.u32 %s837_s13, 2  ;;  %v1799_v1 = vld [vmem:[#allocation10 + $0xd8] sm:$0xff] (!%p1512_p11)   ;;  %v1803_v5 = vld [vmem:[#allocation10 + $0xe0] sm:$0xff] (!%p1512_p11)  }
 0x1b0   : > { %1609 = vmatpush3.bf16.xpose.msra.mxu0 %v836_v29  ;;  %v831_v30 = vld [vmem:[%s830_s30] sm:$0xf]  ;;  %s840_s29 = scalar_lea.vmem [#allocation2], %s1509_s8  ;;  %v1800_v2 = vld [vmem:[#allocation10 + $0x18] sm:$0xff] (!%p1512_p11)   ;;  %v1804_v6 = vld [vmem:[#allocation10 + $0x20] sm:$0xff] (!%p1512_p11)  }
 0x1b1   : > { %v841_v36 = vld [vmem:[%s840_s29] sm:$0xf]  ;;  %1564 = vmatprep.subr.bf16.mxu0 (!%p1512_p11), %v1786_v52  ;;  %v1801_v3 = vld [vmem:[#allocation10 + $0x98] sm:$0xff] (!%p1512_p11)   ;;  %v1805_v7 = vld [vmem:[#allocation10 + $0xa0] sm:$0xff] (!%p1512_p11)  }
 0x1b2   : > { %v898_v37 = vsel %vm896_vm3, %v841_v36, 0  ;;  %v1807_v9 = vld [vmem:[#allocation10 + $0xe8] sm:$0xff] (!%p1512_p11)   ;;  %v1810_v12 = vld [vmem:[#allocation10 + $0x70] sm:$0xff] (!%p1512_p11)   ;;  %v1814_v16 = vld [vmem:[#allocation10 + $0x78] sm:$0xff] (!%p1512_p11)  }
 0x1b3   : > { %1615 = vmatpush3.bf16.msra.mxu1 %v898_v37  ;;  %v1808_v10 = vld [vmem:[#allocation10 + $0x28] sm:$0xff] (!%p1512_p11)   ;;  %v1811_v13 = vld [vmem:[#allocation10 + $0xf0] sm:$0xff] (!%p1512_p11)   ;;  %v1815_v17 = vld [vmem:[#allocation10 + $0xf8] sm:$0xff] (!%p1512_p11)  }
 0x1b4   : > { %1586 = vmatprep.subr.bf16.mxu1 (!%p1512_p11), %v1787_v53  ;;  %v1809_v11 = vld [vmem:[#allocation10 + $0xa8] sm:$0xff] (!%p1512_p11)   ;;  %v1812_v14 = vld [vmem:[#allocation10 + $0x30] sm:$0xff] (!%p1512_p11)   ;;  %v1816_v18 = vld [vmem:[#allocation10 + $0x38] sm:$0xff] (!%p1512_p11)  }
 0x1b5   : > { %v1813_v15 = vld [vmem:[#allocation10 + $0xb0] sm:$0xff] (!%p1512_p11)   ;;  %v1817_v19 = vld [vmem:[#allocation10 + $0xb8] sm:$0xff] (!%p1512_p11)   ;;  %v1513_v28 = vld [vmem:[#allocation12] ss:$0 sm:$0xff] (!%p1512_p11) }
 0x1b7   : > { %1611 = vmatmul.mubr.bf16.vlgmr.msra.gmra.mrb[0].mxu0 %v831_v30 }
 0x1b8   : > { %1565 = vmatpush3.bf16.msra.mxu0 (!%p1512_p11), %v1788_v54 }
 0x1b9   : > { %1566 = vmatprep.subr.bf16.mxu0 (!%p1512_p11), %v1790_v56 }
 0x1bc   : > { %1567 = vmatpush3.bf16.msra.mxu0 (!%p1512_p11), %v1792_v58 }
 0x1bd   : > { %1568 = vmatprep.subr.bf16.mxu0 (!%p1512_p11), %v1794_v60 }
 0x1c0   : > { %1569 = vmatpush3.bf16.msra.mxu0 (!%p1512_p11), %v1796_v62 }
 0x1c1   : > { %1570 = vmatprep.subr.bf16.mxu0 (!%p1512_p11), %v1798_v0 }
 0x1c4   : > { %1571 = vmatpush3.bf16.msra.mxu0 (!%p1512_p11), %v1800_v2 }
 0x1c5   : > { %1572 = vmatprep.subr.bf16.mxu0 (!%p1512_p11), %v1802_v4 }
 0x1c8   : > { %1573 = vmatpush3.bf16.msra.mxu0 (!%p1512_p11), %v1804_v6 }
 0x1c9   : > { %1574 = vmatprep.subr.bf16.mxu0 (!%p1512_p11), %v1806_v8 }
 0x1cc   : > { %1575 = vmatpush3.bf16.msra.mxu0 (!%p1512_p11), %v1808_v10 }
 0x1cd   : > { %1576 = vmatprep.subr.bf16.mxu0 (!%p1512_p11), %v1810_v12 }
 0x1d0   : > { %1577 = vmatpush3.bf16.msra.mxu0 (!%p1512_p11), %v1812_v14 }
 0x1d1   : > { %1578 = vmatprep.subr.bf16.mxu0 (!%p1512_p11), %v1814_v16 }
 0x1d4   : > { %1579 = vmatpush3.bf16.msra.mxu0 (!%p1512_p11), %v1816_v18 }
 0x28a   : > { %v876_v31 = vpop.f32.mrb[0].mxu0 }
 0x28b   : > { %v1612_v32 = vpop.f32.mrb[1].mxu0  ;;  %v883_v33 = vsel %vm882_vm2, %v876_v31, -inf }
 0x28c   : > { %884 = vmax.xlane.f32.xlu0 %v883_v33  ;;  %v879_v34 = vpop.f32.mrb[2].mxu0 }
 0x28d   : > { %v1613_v35 = vpop.f32.mrb[3].mxu0 }
 0x319   : > { %v885_v38 = vpop.xlane.xlu0 %884 }
 0x31a   : > { %v886_v39 = vsub.f32 %v876_v31, %v885_v38 }
 0x31c   : > { %v887_v40 = vmul.f32 1.442695, %v886_v39 }
 0x31e   : > { %1782 = vpow2.f32 %v887_v40 }
 0x328   : > { %v1783_v41 = vpop.eup %1782 }
 0x329   : > { %v889_v42 = vsel %vm882_vm2, %v1783_v41, 0.0  ;;  %v892_v43 = vpack.c.bf16 %v1783_v41, %v1783_v41 }
 0x32a   : > { %890 = vadd.xlane.f32.xlu0 %v889_v42 }
 0x32b   : > { %1617 = vmatmul.mubr.msk.bf16.vlgmr.msra.gmra.mrb[0].mxu1 %vm882_vm2, %v892_v43 }
 0x32c   : > { %1587 = vmatpush3.bf16.msra.mxu1 (!%p1512_p11), %v1789_v55 }
 0x32d   : > { %1588 = vmatprep.subr.bf16.mxu1 (!%p1512_p11), %v1791_v57 }
 0x330   : > { %1589 = vmatpush3.bf16.msra.mxu1 (!%p1512_p11), %v1793_v59 }
 0x331   : > { %1590 = vmatprep.subr.bf16.mxu1 (!%p1512_p11), %v1795_v61 }
 0x334   : > { %1591 = vmatpush3.bf16.msra.mxu1 (!%p1512_p11), %v1797_v63 }
 0x335   : > { %1592 = vmatprep.subr.bf16.mxu1 (!%p1512_p11), %v1799_v1 }
 0x338   : > { %1593 = vmatpush3.bf16.msra.mxu1 (!%p1512_p11), %v1801_v3 }
 0x339   : > { %1594 = vmatprep.subr.bf16.mxu1 (!%p1512_p11), %v1803_v5 }
 0x33c   : > { %1595 = vmatpush3.bf16.msra.mxu1 (!%p1512_p11), %v1805_v7 }
 0x33d   : > { %1596 = vmatprep.subr.bf16.mxu1 (!%p1512_p11), %v1807_v9 }
 0x340   : > { %1597 = vmatpush3.bf16.msra.mxu1 (!%p1512_p11), %v1809_v11 }
 0x341   : > { %1598 = vmatprep.subr.bf16.mxu1 (!%p1512_p11), %v1811_v13 }
 0x344   : > { %1599 = vmatpush3.bf16.msra.mxu1 (!%p1512_p11), %v1813_v15 }
 0x345   : > { %1600 = vmatprep.subr.bf16.mxu1 (!%p1512_p11), %v1815_v17 }
 0x348   : > { %1601 = vmatpush3.bf16.msra.mxu1 (!%p1512_p11), %v1817_v19 }
 0x3b7   : > { %v891_v44 = vpop.xlane.xlu0 %890 }
 0x3b8   : > { %1784 = vrcp.f32 %v891_v44 }
 0x3c2   : > { %v1785_v45 = vpop.eup %1784 }
 0x3fd   : > { %949 = sbr.rel (%p1512_p11) target bundleno = 1258 (0x4ea), region = 68 }
 0x3fe   : > { %v934_v46 = vpop.f32.mrb[0].mxu1 }
 0x3ff   : > { %v941_v47 = vmul.f32 %v1785_v45, %v934_v46  ;;  %v1618_v48 = vpop.f32.mrb[1].mxu1 }
 0x400   : > { %v937_v49 = vpop.f32.mrb[2].mxu1 }
 0x401   : > { %v942_v50 = vpack.c.bf16 %v941_v47, %v941_v47  ;;  %v1619_v51 = vpop.f32.mrb[3].mxu1 }
 0x403   : > { %945 = vst [vmem:[%s944_s2] sm:$0xf] %v942_v50 }
 0x40a   : > { %v950_v20 = vld [vmem:[#allocation3] sm:$0xff]  ;;  %v951_v21 = vld [vmem:[#allocation3 + $0x8] sm:$0xff] }
 0x40b   : > { %v1514_v22 = vcombine.low %v950_v20, %v950_v20  ;;  %v1515_v23 = vcombine.high %v950_v20, %v950_v20  ;;  %v1516_v24 = vcombine.low %v951_v21, %v951_v21  ;;  %v1517_v25 = vcombine.high %v951_v21, %v951_v21 }
 0x40d   : > { %1261 = vmatprep.mubr.bf16.mxu0 %v1515_v23  ;;  %1301 = vmatprep.mubr.bf16.mxu1 %v1517_v25 }
 0x40e   : > { %1262 = vmatmul.mubr.bf16.vlgmr.msra.gmra.mrb[0].mxu0 %v1514_v22  ;;  %1302 = vmatmul.mubr.bf16.vlgmr.msra.gmra.mrb[0].mxu1 %v1516_v24 }
 0x4e1   : > { %v1580_v26 = vpop.f32.mrb[0].mxu0  ;;  %v1602_v27 = vpop.f32.mrb[0].mxu1 }
 0x4e2   : > { %v1581_v29 = vpop.f32.mrb[1].mxu0  ;;  %v1603_v30 = vpop.f32.mrb[1].mxu1 }
 0x4e3   : > { %v1582_v31 = vadd.f32 %v1581_v29, %v1580_v26  ;;  %v1604_v32 = vadd.f32 %v1603_v30, %v1602_v27  ;;  %v1583_v33 = vpop.f32.mrb[2].mxu0  ;;  %v1605_v34 = vpop.f32.mrb[2].mxu1 }
 0x4e4   : > { %v1584_v35 = vpop.f32.mrb[3].mxu0  ;;  %v1606_v36 = vpop.f32.mrb[3].mxu1 }
 0x4e5   : > { %v1264_v37 = vadd.f32 %v1582_v31, %v1513_v28 }
 0x4e7   : > { %v1304_v38 = vadd.f32 %v1604_v32, %v1264_v37 }
 0x4e9   : > { %1310 = vst.msk [vmem:[%s2369_s28] sm:$0xff] %vm1309_vm4, %v1304_v38 }
 0x4ea PF: > { %s1551_s21 = sshll.u32 %s2058_s22, 7  ;;  %s1325_s15 = sshll.u32 %s2369_s28, 4  ;;  %s1326_s15 = int_to_ptr.vmem [resolvable:$true] %s1325_s15 }
 0x4eb   : > { %s2392_s9 = scalar_lea.hbm %s2446_s5, %s1551_s21  ;;  %s1312_s26 = scalar_lea.sflag [#allocation6], %s2352_s3 }
 0x4ec   : > { %s1964_s17 = scalar_lea.vmem %s1326_s15, 128  ;;  %p2471_p3 = scmp.ne.s32.totalorder %s2466_s12, 0 }
 0x4ed   : > { %p1965_p7 = scmp.ne.s32.totalorder %s1326_s15, %s1964_s17  ;;  %s2084_s14 = smov [#allocation13]  }
 0x4ee   : > { %s1968_s30 = sshll.u32 %s2084_s14, 4  ;;  %s1969_s30 = int_to_ptr.vmem [resolvable:$false] %s1968_s30 }
 0x4ef   : > { %p1966_p13 = pnand %p1965_p7, %p2471_p3  ;;  %s1970_s7 = scalar_lea.vmem %s1969_s30, 256 }
 0x4f0   : > { %p1971_p2 = scmp.lt.s32.totalorder %s1326_s15, %s1969_s30  ;;  %p1972_p6 = scmp.lt.s32.totalorder %s1970_s7, %s1964_s17 }
 0x4f1   : > { %p1967_p0 = pneg %p1966_p13 }
 0x4f2   : > { %p1973_p1 = por %p1972_p6, %p1971_p2 }
 0x4f4   : > { %p1974_p9 = pnand %p1973_p1, %p1967_p0 }
 0x4f6   : > { %1977 = shalt.err (!%p1974_p9)
}
 0x4f7   : > { %s1978_s22 = scalar_lea.hbm %s2392_s9, 128  ;;  %s1982_s13 = scalar_lea.hbm %s2446_s5, 256 }
 0x4f8   : > { %p1979_p5 = scmp.ne.s32.totalorder %s2392_s9, %s1978_s22  ;;  %p1983_p12 = scmp.lt.u32.totalorder %s2392_s9, %s2446_s5 }
 0x4f9   : > { %p1984_p4 = scmp.lt.u32.totalorder %s1982_s13, %s1978_s22  ;;  %p1986_p7 = scmp.lt.u32.totalorder %s1978_s22, %s2392_s9 }
 0x4fa   : > { %p1980_p10 = pnand %p1979_p5, %p2471_p3 }
 0x4fb   : > { %p1985_p11 = por %p1984_p4, %p1983_p12 }
 0x4fc   : > { %p1981_p8 = pneg %p1980_p10 }
 0x4fd   : > { %p1987_p13 = por %p1986_p7, %p1985_p11 }
 0x4ff   : > { %p1988_p0 = pnand %p1987_p13, %p1981_p8 }
 0x501   : > { %1991 = shalt.err (!%p1988_p0)
}
 0x502   : > { %1638 = dma.vmem_to_hbm [thread:$0]  (%p2471_p3), %s1326_s15, 128, %s2392_s9, %s1312_s26  }
 0x503 PF: > { %p1670_p2 = scmp.ge.s32.totalorder %s2070_s25, 2  ;;  %s1337_s2 = sand.u32 1, %s2042_s18  }
 0x504   : > { %p2472_p6 = scmp.ne.s32.totalorder %s2467_s16, 0  ;;  %s1338_s21 = scalar_lea.sflag [#allocation6], %s1337_s2 }
 0x506   : > { %p1658_p1 = pnand %p1670_p2, %p2472_p6 }
 0x508   : > { %2037 = dma.done.wait (!%p1658_p1), %s1338_s21, 128  }
 0x509   : > { %2039 = vsyncadd (!%p1658_p1), %s1338_s21, 4294967168  ;;  %s23_s25 = sadd.s32 1, %s2070_s25   ;;  %s2473_s18 = smov %s2046_s19 }
 0x50a   : > { %p20_p9 = scmp.ge.s32.totalorder %s23_s25, 10   ;;  %s2474_s19 = smov %s2050_s20 }
 0x50b   : > { %s2475_s20 = smov %s2309_s11  ;;  %s2476_s21 = smov %s2062_s23 }
 0x50c   : > { %s2477_s22 = smov %s2066_s24  ;;  %s2478_s23 = smov %s2481_s1 }
 0x50d   : > { %s2479_s24 = smov %s2485_s6  ;;  %22 = sbr.rel (!%p20_p9) target bundleno = 13 (0xd), region = 113 }
 0x514   :  { %1343 = vsyncpa [#allocation5], 1 }
 0x515   :  { %1345 = vsyncpa [#allocation5 + $0x1], 1 }
 0x516   :  { %1346 = vsyncpa [#allocation8], 1 }
 0x517   :  { %1347 = vsyncpa [#allocation11], 1 }
 0x518   :  { %1348 = vsyncpa [#allocation6], 1 }
 0x519   :  { %1350 = vsyncpa [#allocation6 + $0x1], 1 }

</bundles_post_ra>
